<compile_context>
chip_gen: v6e
topology: v6e:2x2x1
jax: 0.10.0
libtpu: 0.0.40
codegen_flags: <defaults>
</compile_context>

<pallas_src>
import functools

import numpy as np

import jax
import jax.numpy as jnp
from jax.experimental import pallas as pl
from jax.experimental.pallas import tpu as pltpu


_VMEM_SOFT_LIMIT = 12 * 1024 * 1024   # stay under v5e's 16 MiB default scoped VMEM
_VMEM_HARD_LIMIT = 40 * 1024 * 1024   # stay well inside v7x's 64 MiB physical VMEM


def _round_up(x, m):
    return ((x + m - 1) // m) * m


@functools.lru_cache(maxsize=None)
def _build_selection(num_features, seq_dim, single, num_bp_wise, set_or):
    """Per-branch constant 0/1 matrices S_b so that branch_b == X @ S_b.

    Branch output columns are row-major over (channel, position) with 23
    positions per channel; channels ordered [seq..., bp-wise..., epigenetic...].
    Also returns the (1, W) setOR clamp mask (seq columns only) or None.
    """
    seq_block = 23 * seq_dim
    if set_or:
        single_out = True
        num_seq_in = 2          # the raw X still carries both sequence blocks
    else:
        single_out = bool(single)
        num_seq_in = 1 if single_out else 2

    bp_base = num_seq_in * seq_block
    epi_base = bp_base + num_bp_wise * 23
    num_epi = num_features - epi_base
    if num_epi < 0:
        raise ValueError("input feature dim too small for the requested encoding")

    channels = seq_dim + num_bp_wise + num_epi
    branches = 1 if single_out else 2
    wb = channels * 23          # exact width; reshape to (C, 23) is a free bitcast

    mats = []
    for b in range(branches):
        S = np.zeros((num_features, wb), dtype=np.float32)
        # Sequence channels: X[:, off + p*seq_dim + c] -> out[:, c, p]
        seq_srcs = (0, seq_block) if set_or else (b * seq_block,)
        for src0 in seq_srcs:
            for c in range(seq_dim):
                for p in range(23):
                    S[src0 + p * seq_dim + c, c * 23 + p] += 1.0
        # bp-wise channels: pass-through of 23-long blocks
        for i in range(num_bp_wise):
            for p in range(23):
                S[bp_base + i * 23 + p, (seq_dim + i) * 23 + p] = 1.0
        # Epigenetic channels: broadcast each scalar across all 23 positions
        for e in range(num_epi):
            for p in range(23):
                S[epi_base + e, (seq_dim + num_bp_wise + e) * 23 + p] = 1.0
        mats.append(S)

    clamp_cols = seq_dim * 23 if set_or else 0
    mask = None
    if clamp_cols:
        mask = (np.arange(wb) < clamp_cols).astype(np.float32)[None, :]
    return tuple(mats), mask, channels, branches, wb


def _vmem_bytes(tile, num_features, wb, branches, out_itemsize, use_mask):
    b = 2 * tile * num_features * 4                    # input X (double-buffered)
    b += 2 * branches * tile * wb * out_itemsize       # outputs (double-buffered)
    b += 2 * branches * num_features * wb * 2          # bf16 selection matrices
    if use_mask:
        b += 2 * wb * 4
    return b


def _encode_kernel(*refs, two_branches, use_clamp_mask):
    n_in = 2 + (1 if two_branches else 0) + (1 if use_clamp_mask else 0)
    in_refs, out_refs = refs[:n_in], refs[n_in:]
    x_ref = in_refs[0]
    s_t_ref = in_refs[1]
    pos = 2
    s_g_ref = None
    if two_branches:
        s_g_ref = in_refs[pos]
        pos += 1
    mask_ref = in_refs[pos] if use_clamp_mask else None
    o_t_ref = out_refs[0]
    o_g_ref = out_refs[1] if two_branches else None

    # Exact 3-way bf16 split of the f32 input: x == x0 + x1 + x2 bit-exactly
    # (3 * 8 mantissa bits cover f32's 24).  Each dot below is ONE bf16 MXU
    # pass with f32 accumulation; since S entries are 0/1 and each output
    # column selects (or OR-sums) source elements, the recombination is exact.
    x = x_ref[...]
    x0 = x.astype(jnp.bfloat16)
    r1 = x - x0.astype(jnp.float32)
    x1 = r1.astype(jnp.bfloat16)
    x2 = (r1 - x1.astype(jnp.float32)).astype(jnp.bfloat16)

    def select(s_ref):
        s = s_ref[...]
        y = jnp.dot(x0, s, preferred_element_type=jnp.float32)
        y = y + jnp.dot(x1, s, preferred_element_type=jnp.float32)
        y = y + jnp.dot(x2, s, preferred_element_type=jnp.float32)
        return y

    y_t = select(s_t_ref)
    if use_clamp_mask:
        # setOR: clamp(seq_target + seq_grna, 0, 1) on the seq columns only.
        # Mask is a precomputed (1, W) constant -> no per-step iota.
        m = mask_ref[...]
        y_t = jnp.where(m > 0.5, jnp.clip(y_t, 0.0, 1.0), y_t)
    o_t_ref[...] = y_t.astype(o_t_ref.dtype)

    if two_branches:
        o_g_ref[...] = select(s_g_ref).astype(o_g_ref.dtype)


@functools.partial(
    jax.jit,
    static_argnames=("seq_dim", "single", "num_bp_wise", "set_or", "tile_b",
                     "out_dtype"),
)
def vec_to_mat_encoding(X, *, seq_dim=4, single=False, num_bp_wise=0,
                        set_or=False, tile_b=1024, out_dtype=jnp.float32):
    """Pallas/TPU port of vecToMatEncoding (PyTorch branch semantics)."""
    X = jnp.asarray(X, jnp.float32)
    batch, num_features = X.shape

    mats_np, mask_np, channels, branches, wb = _build_selection(
        int(num_features), int(seq_dim), bool(single), int(num_bp_wise),
        bool(set_or))
    s_mats = [jnp.asarray(m, jnp.bfloat16) for m in mats_np]   # 0/1: bf16-exact
    use_mask = mask_np is not None
    out_itemsize = int(np.dtype(out_dtype).itemsize)

    # Batch tile: big enough to amortize the ~0.35us/step overhead, but capped
    # at ceil(batch/2) so the "parallel" grid has >= 2 steps and both v7x
    # TensorCores get work.  No jnp.pad: the ragged last block is handled by
    # Pallas (OOB output rows are dropped).
    half = _round_up(max(1, -(-batch // 2)), 8)
    tile = max(8, min(int(tile_b), half))

    # VMEM budget guard (S and the per-tile output scale with channel count;
    # v7x only has 64 MiB physical / 32 MiB default-scoped VMEM).
    while (_vmem_bytes(tile, num_features, wb, branches, out_itemsize, use_mask)
           > _VMEM_SOFT_LIMIT and tile > 256):
        tile = max(256, _round_up(tile // 2, 8))
    est = _vmem_bytes(tile, num_features, wb, branches, out_itemsize, use_mask)
    if est > _VMEM_HARD_LIMIT:
        # TODO(synk): add a width (channel) grid axis tiling S for very large
        # epigenetic-track counts instead of erroring out.
        raise ValueError(
            f"vec_to_mat_encoding working set ({est} bytes) exceeds the VMEM "
            f"budget; reduce the number of channels or add width tiling")
    vmem_limit = (est + (4 << 20)) if est > _VMEM_SOFT_LIMIT else None

    grid = (pl.cdiv(batch, tile),)

    in_arrays = [X] + s_mats
    in_specs = [pl.BlockSpec((tile, num_features), lambda i: (i, 0))]
    in_specs += [pl.BlockSpec((num_features, wb), lambda i: (0, 0))
                 for _ in s_mats]                                   # resident S
    if use_mask:
        in_arrays.append(jnp.asarray(mask_np, jnp.float32))
        in_specs.append(pl.BlockSpec((1, wb), lambda i: (0, 0)))

    out_block = pl.BlockSpec((tile, wb), lambda i: (i, 0))
    if branches == 1:
        out_shape = jax.ShapeDtypeStruct((batch, wb), out_dtype)
        out_specs = out_block
    else:
        out_shape = (jax.ShapeDtypeStruct((batch, wb), out_dtype),
                     jax.ShapeDtypeStruct((batch, wb), out_dtype))
        out_specs = (out_block, out_block)

    flops = int(2 * batch * num_features * wb * branches * 3)   # 3 bf16 passes
    bytes_accessed = int(4 * batch * num_features
                         + out_itemsize * batch * branches * wb
                         + 2 * branches * num_features * wb)

    kernel = functools.partial(_encode_kernel,
                               two_branches=(branches == 2),
                               use_clamp_mask=use_mask)

    result = pl.pallas_call(
        kernel,
        out_shape=out_shape,
        grid_spec=pltpu.PrefetchScalarGridSpec(
            num_scalar_prefetch=0,
            grid=grid,
            in_specs=in_specs,
            out_specs=out_specs,
        ),
        compiler_params=pltpu.CompilerParams(
            dimension_semantics=("parallel",),   # batch axis shards across v7x TCs
            vmem_limit_bytes=vmem_limit,
        ),
        cost_estimate=pl.CostEstimate(flops=flops, transcendentals=0,
                                      bytes_accessed=bytes_accessed),
    )(*in_arrays)

    # (B, C*23) -> (B, C, 23) is layout-preserving: XLA lowers it to a bitcast,
    # so there is no post-kernel copy/slice.
    if branches == 1:
        return result.reshape(batch, channels, 23)
    out_t, out_g = result
    return (out_t.reshape(batch, channels, 23),
            out_g.reshape(batch, channels, 23))


class VecToMatEncoder:
    """Configuration mirror of the torch vecToMatEncoder module."""

    def __init__(self, siamese, seqDim, interfaceMode, numBpWise, setOR,
                 CRISPRNetStyle=False):
        self.siamese = siamese
        self.seqDim = seqDim
        self.numBpWise = numBpWise
        self.setOR = setOR
        self.sequencesEncodedAsOne = bool(interfaceMode or CRISPRNetStyle)

    def __call__(self, dataset):
        return vec_to_mat_encoding(
            dataset,
            seq_dim=self.seqDim,
            single=self.sequencesEncodedAsOne,
            num_bp_wise=self.numBpWise,
            set_or=self.setOR,
        )


# ----------------------------- reference & demo -----------------------------

def _reference_encoding(X, seq_dim, single, num_bp_wise, set_or):
    """NumPy mirror of the torch branch of vecToMatEncoding."""
    X = np.asarray(X, np.float32)
    n = X.shape[0]
    sb = 23 * seq_dim
    if set_or:
        X = np.concatenate(
            [np.clip(X[:, :sb] + X[:, sb:2 * sb], 0.0, 1.0), X[:, 2 * sb:]],
            axis=1)
        single = True
    ns = 1 if single else 2
    feats = []
    for i in range(ns):
        feats.append(
            X[:, i * sb:(i + 1) * sb].reshape(n, 23, seq_dim).transpose(0, 2, 1))
    for i in range(num_bp_wise):
        s = ns * sb + i * 23
        feats.append(X[:, s:s + 23].reshape(n, 23, 1).transpose(0, 2, 1))
    epi = np.repeat(X[:, ns * sb + num_bp_wise * 23:, None], 23, axis=2)
    if single:
        return np.concatenate([feats[0]] + feats[1:] + [epi], axis=1)
    tgt = np.concatenate([feats[0]] + feats[2:] + [epi], axis=1)
    grna = np.concatenate([feats[1]] + feats[2:] + [epi], axis=1)
    return tgt, grna


def _make_input(key, batch, seq_dim, num_seq, num_bp_wise, num_epi):
    k_seq, k_bp, k_epi = jax.random.split(key, 3)
    blocks = []
    for s in range(num_seq):   # one-hot encoded 23-mers, flat index = p*seq_dim + d
        nuc = jax.random.randint(jax.random.fold_in(k_seq, s), (batch, 23), 0, seq_dim)
        blocks.append(
            jax.nn.one_hot(nuc, seq_dim, dtype=jnp.float32).reshape(batch, 23 * seq_dim))
    if num_bp_wise:
        bp = jax.random.bernoulli(k_bp, 0.5, (batch, 23 * num_bp_wise))
        blocks.append(bp.astype(jnp.float32))
    if num_epi:
        # Raw f32 values: the 3-way bf16 split keeps the pass-through exact.
        blocks.append(jax.random.uniform(k_epi, (batch, num_epi), jnp.float32))
    return jnp.concatenate(blocks, axis=1)


if __name__ == "__main__":
    key = jax.random.PRNGKey(0)
    k_a, k_b = jax.random.split(key)
    batch, seq_dim = 16, 4

    # Config A: siamese (two sequences), 1 bp-wise feature, 5 epigenetic tracks.
    enc_a = VecToMatEncoder(siamese=True, seqDim=seq_dim, interfaceMode=False,
                            numBpWise=1, setOR=False)
    x_a = _make_input(k_a, batch, seq_dim, num_seq=2, num_bp_wise=1, num_epi=5)
    out_t, out_g = enc_a(x_a)
    jax.block_until_ready((out_t, out_g))
    ref_t, ref_g = _reference_encoding(x_a, seq_dim, single=False,
                                       num_bp_wise=1, set_or=False)
    assert out_t.shape == ref_t.shape == (batch, seq_dim + 1 + 5, 23)
    assert out_g.shape == ref_g.shape
    assert np.allclose(np.asarray(out_t), ref_t, rtol=0.0, atol=1e-6)
    assert np.allclose(np.asarray(out_g), ref_g, rtol=0.0, atol=1e-6)

    # Config B: setOR encoding (sequences OR-combined, single branch), 3 epi tracks.
    enc_b = VecToMatEncoder(siamese=True, seqDim=seq_dim, interfaceMode=False,
                            numBpWise=0, setOR=True)
    x_b = _make_input(k_b, batch, seq_dim, num_seq=2, num_bp_wise=0, num_epi=3)
    out_or = enc_b(x_b)
    jax.block_until_ready(out_or)
    ref_or = _reference_encoding(x_b, seq_dim, single=False,
                                 num_bp_wise=0, set_or=True)
    assert out_or.shape == ref_or.shape == (batch, seq_dim + 3, 23)
    assert np.allclose(np.asarray(out_or), ref_or, rtol=0.0, atol=1e-6)

    print("KERNEL_OK")
</pallas_src>

<mosaic_0001>
module attributes {stable_mosaic.version = 11 : i64} {
  func.func @_encode_kernel(%arg0: i32, %arg1: memref<8x212xf32, #tpu.memory_space<vmem>>, %arg2: memref<212x230xbf16, #tpu.memory_space<vmem>>, %arg3: memref<212x230xbf16, #tpu.memory_space<vmem>>, %arg4: memref<8x230xf32, #tpu.memory_space<vmem>>, %arg5: memref<8x230xf32, #tpu.memory_space<vmem>>) attributes {dimension_semantics = [#tpu.dimension_semantics<parallel>], iteration_bounds = array<i64: 2>, scalar_prefetch = 0 : i64, scratch_operands = 0 : i64, tpu.core_type = #tpu.core_type<tc>, window_params = [{transform_indices = @transform_0, window_bounds = array<i64: 8, 212>}, {pipeline_mode = #tpu.pipeline_mode<synchronous>, transform_indices = @transform_1, window_bounds = array<i64: 212, 230>}, {pipeline_mode = #tpu.pipeline_mode<synchronous>, transform_indices = @transform_2, window_bounds = array<i64: 212, 230>}, {transform_indices = @transform_3, window_bounds = array<i64: 8, 230>}, {transform_indices = @transform_4, window_bounds = array<i64: 8, 230>}]} {
    %c0 = arith.constant 0 : index
    %c0_0 = arith.constant 0 : index
    %0 = vector.load %arg1[%c0, %c0_0] : memref<8x212xf32, #tpu.memory_space<vmem>>, vector<8x212xf32>
    %1 = arith.truncf %0 : vector<8x212xf32> to vector<8x212xbf16>
    %2 = arith.extf %1 : vector<8x212xbf16> to vector<8x212xf32>
    %3 = arith.subf %0, %2 : vector<8x212xf32>
    %4 = arith.truncf %3 : vector<8x212xf32> to vector<8x212xbf16>
    %5 = arith.extf %4 : vector<8x212xbf16> to vector<8x212xf32>
    %6 = arith.subf %3, %5 : vector<8x212xf32>
    %7 = arith.truncf %6 : vector<8x212xf32> to vector<8x212xbf16>
    %c0_1 = arith.constant 0 : index
    %c0_2 = arith.constant 0 : index
    %8 = vector.load %arg2[%c0_1, %c0_2] : memref<212x230xbf16, #tpu.memory_space<vmem>>, vector<212x230xbf16>
    %cst = arith.constant dense<0.000000e+00> : vector<8x230xf32>
    %9 = tpu.matmul %1, %8, %cst {dimension_numbers = #tpu.dot_dimension_numbers<[1], [0], [0], [1], [0, 0, 1, 1], [], []>} : vector<8x212xbf16>, vector<212x230xbf16>, vector<8x230xf32> -> vector<8x230xf32>
    %cst_3 = arith.constant dense<0.000000e+00> : vector<8x230xf32>
    %10 = tpu.matmul %4, %8, %cst_3 {dimension_numbers = #tpu.dot_dimension_numbers<[1], [0], [0], [1], [0, 0, 1, 1], [], []>} : vector<8x212xbf16>, vector<212x230xbf16>, vector<8x230xf32> -> vector<8x230xf32>
    %11 = arith.addf %9, %10 : vector<8x230xf32>
    %cst_4 = arith.constant dense<0.000000e+00> : vector<8x230xf32>
    %12 = tpu.matmul %7, %8, %cst_4 {dimension_numbers = #tpu.dot_dimension_numbers<[1], [0], [0], [1], [0, 0, 1, 1], [], []>} : vector<8x212xbf16>, vector<212x230xbf16>, vector<8x230xf32> -> vector<8x230xf32>
    %13 = arith.addf %11, %12 : vector<8x230xf32>
    %c0_5 = arith.constant 0 : index
    %c0_6 = arith.constant 0 : index
    %14 = vector.load %arg4[%c0_5, %c0_6] : memref<8x230xf32, #tpu.memory_space<vmem>>, vector<8x230xf32>
    tpu.vector_store %arg4[%c0_5, %c0_6], %13 {strides = array<i32>} : memref<8x230xf32, #tpu.memory_space<vmem>>, vector<8x230xf32>,
    %c0_7 = arith.constant 0 : index
    %c0_8 = arith.constant 0 : index
    %15 = vector.load %arg3[%c0_7, %c0_8] : memref<212x230xbf16, #tpu.memory_space<vmem>>, vector<212x230xbf16>
    %cst_9 = arith.constant dense<0.000000e+00> : vector<8x230xf32>
    %16 = tpu.matmul %1, %15, %cst_9 {dimension_numbers = #tpu.dot_dimension_numbers<[1], [0], [0], [1], [0, 0, 1, 1], [], []>} : vector<8x212xbf16>, vector<212x230xbf16>, vector<8x230xf32> -> vector<8x230xf32>
    %cst_10 = arith.constant dense<0.000000e+00> : vector<8x230xf32>
    %17 = tpu.matmul %4, %15, %cst_10 {dimension_numbers = #tpu.dot_dimension_numbers<[1], [0], [0], [1], [0, 0, 1, 1], [], []>} : vector<8x212xbf16>, vector<212x230xbf16>, vector<8x230xf32> -> vector<8x230xf32>
    %18 = arith.addf %16, %17 : vector<8x230xf32>
    %cst_11 = arith.constant dense<0.000000e+00> : vector<8x230xf32>
    %19 = tpu.matmul %7, %15, %cst_11 {dimension_numbers = #tpu.dot_dimension_numbers<[1], [0], [0], [1], [0, 0, 1, 1], [], []>} : vector<8x212xbf16>, vector<212x230xbf16>, vector<8x230xf32> -> vector<8x230xf32>
    %20 = arith.addf %18, %19 : vector<8x230xf32>
    %c0_12 = arith.constant 0 : index
    %c0_13 = arith.constant 0 : index
    %21 = vector.load %arg5[%c0_12, %c0_13] : memref<8x230xf32, #tpu.memory_space<vmem>>, vector<8x230xf32>
    tpu.vector_store %arg5[%c0_12, %c0_13], %20 {strides = array<i32>} : memref<8x230xf32, #tpu.memory_space<vmem>>, vector<8x230xf32>,
    return
  }
  func.func @transform_0(%arg0: i32) -> (i32, i32) {
    %c0_i32 = arith.constant 0 : i32
    %c0_i32_0 = arith.constant 0 : i32
    return %arg0, %c0_i32 : i32, i32
  }
  func.func @transform_1(%arg0: i32) -> (i32, i32) {
    %c0_i32 = arith.constant 0 : i32
    %c0_i32_0 = arith.constant 0 : i32
    %c0_i32_1 = arith.constant 0 : i32
    return %c0_i32, %c0_i32_0 : i32, i32
  }
  func.func @transform_2(%arg0: i32) -> (i32, i32) {
    %c0_i32 = arith.constant 0 : i32
    %c0_i32_0 = arith.constant 0 : i32
    %c0_i32_1 = arith.constant 0 : i32
    return %c0_i32, %c0_i32_0 : i32, i32
  }
  func.func @transform_3(%arg0: i32) -> (i32, i32) {
    %c0_i32 = arith.constant 0 : i32
    %c0_i32_0 = arith.constant 0 : i32
    return %arg0, %c0_i32 : i32, i32
  }
  func.func @transform_4(%arg0: i32) -> (i32, i32) {
    %c0_i32 = arith.constant 0 : i32
    %c0_i32_0 = arith.constant 0 : i32
    return %arg0, %c0_i32 : i32, i32
  }
}

</mosaic_0001>

<bundles_post_ra>
// kernel: vec_to_mat_encoding.1
= control target key start
LH: loop header
LB: loop body
LE: loop exit
PB: predicated region body
PF: predicated region fallthrough
CT: control target
= control target key end

     0   :  { %10 = vsyncpa [#allocation3], 0  ;;  %s1846_s0 = inlined_call_operand.hbm [shape: f32[16,212], index: 0, kind: input, shape index: {}]   ;;  %s1847_s1 = inlined_call_operand.hbm [shape: bf16[212,230], index: 1, kind: input, shape index: {}]   ;;  %s1848_s2 = inlined_call_operand.hbm [shape: bf16[212,230], index: 2, kind: input, shape index: {}]   ;;  %s1849_s3 = inlined_call_operand.vmem [shape: f32[16,230], index: 3, kind: output, shape index: {0}]   ;;  %s1850_s4 = inlined_call_operand.vmem [shape: f32[16,230], index: 4, kind: output, shape index: {1}]  }
   0x1   :  { %12 = vsyncpa [#allocation3 + $0x1], 0 }
   0x2   :  { %13 = vsyncpa [#allocation5], 0  ;;  %s1379_s15 = smov 0   ;;  %s1381_s16 = smov 0  }
   0x3   :  { %s1383_s17 = smov 0   ;;  %s1385_s18 = smov 0  }
   0x4 LB: > { %s1398_s19 = sadd.s32 4294967295, %s1347_s18   ;;  %p39_p0 = scmp.ne.s32.totalorder %s1339_s16, %s1335_s15  ;;  %s1347_s18 = sphi %s1385_s18, %s1865_s18   ;;  %s1343_s17 = sphi %s1383_s17, %s1864_s17   ;;  %s1339_s16 = sphi %s1381_s16, %s1863_s16   ;;  %s1335_s15 = sphi %s1379_s15, %s1862_s15  }
   0x5   : > { %p1851_p1 = scmp.eq.s32.totalorder %s1398_s19, 0  ;;  %p997_p2 = scmp.ge.s32.totalorder %s1347_s18, 1 }
   0x6   : > { %p144_p3 = scmp.lt.s32.totalorder %s1347_s18, 3  ;;  %s1349_s22 = smov [#allocation4]  }
   0x7   : > { %p1406_p4 = por %p1851_p1, %p39_p0  ;;  %s156_s23 = sshll.u32 %s1349_s22, 4  ;;  %s157_s23 = int_to_ptr.vmem [resolvable:$true] %s156_s23 }
   0x8   : > { %p1410_p5 = pnand %p997_p2, %p144_p3  ;;  %s1350_s25 = smov [#allocation6]  }
   0x9   : > { %s1854_s20 = scalar_select %p1406_p4, 1, 0 }
   0xa   : > { %s1855_s21 = scalar_select %p1410_p5, 1, 0 }
   0xb   : > { %p1095_p6 = pneg %p1410_p5  ;;  %s169_s26 = sshll.u32 %s1350_s25, 4  ;;  %s170_s26 = int_to_ptr.vmem [resolvable:$true] %s169_s26 }
   0xc   : > { %s1240_s27 = scalar_lea.vmem %s157_s23, 3456  ;;  %p1248_p12 = scmp.lt.s32.totalorder %s157_s23, %s157_s23 }
   0xd   : > { %p1418_p7 = pnand %p1095_p6, %p1851_p1  ;;  %p1241_p9 = scmp.ne.s32.totalorder %s157_s23, %s1240_s27 }
   0xe   : > { %p1249_p13 = scmp.lt.s32.totalorder %s1240_s27, %s1240_s27 }
   0xf   : > { %p1231_p8 = pneg %p1418_p7 }
  0x10   : > { %p1250_p0 = por %p1249_p13, %p1248_p12 }
  0x11   : > { %p1243_p10 = pnand %p1241_p9, %p1231_p8 }
  0x13   : > { %p1244_p11 = pneg %p1243_p10 }
  0x15   : > { %p1251_p2 = pnand %p1250_p0, %p1244_p11 }
  0x17   : > { %1254 = shalt.err (!%p1251_p2)
}
  0x18   : > { %s1351_s28 = smov 128   ;;  %s1352_s29 = smov 8  }
  0x19   : > { %1098 = dma.hbm_to_vmem [thread:$0]  (!%p1418_p7), %s1847_s1, 3456, %s157_s23, [#allocation5], %s1351_s28, %s1351_s28, %s1352_s29  }
  0x1a   : > { %s1266_s6 = scalar_lea.vmem %s170_s26, 3456  ;;  %p1274_p10 = scmp.lt.s32.totalorder %s170_s26, %s170_s26 }
  0x1b   : > { %p1267_p3 = scmp.ne.s32.totalorder %s170_s26, %s1266_s6  ;;  %p1275_p1 = scmp.lt.s32.totalorder %s1266_s6, %s1266_s6 }
  0x1d   : > { %p1269_p6 = pnand %p1267_p3, %p1231_p8  ;;  %p1276_p12 = por %p1275_p1, %p1274_p10 }
  0x1f   : > { %p1270_p9 = pneg %p1269_p6 }
  0x21   : > { %p1277_p11 = pnand %p1276_p12, %p1270_p9 }
  0x23   : > { %1280 = shalt.err (!%p1277_p11)
}
  0x24   : > { %1101 = dma.hbm_to_vmem [thread:$0]  (!%p1418_p7), %s1848_s2, 3456, %s170_s26, [#allocation5], %s1351_s28, %s1351_s28, %s1352_s29  }
  0x25   : > { %s1441_s9 = sadd.s32 1, %s1347_s18   ;;  %s26_s10 = sadd.s32 1, %s1343_s17 }
  0x26   : > { %s23_s11 = ssub.s32 %s1347_s18, %s1441_s9  ;;  %p33_p1 = scmp.ne.s32.totalorder %s1343_s17, %s1339_s16 }
  0x27   : > { %p24_p8 = scmp.eq.s32.totalorder %s23_s11, 0  ;;  %p34_p13 = scmp.eq.s32.totalorder %s1347_s18, 0 }
  0x28   : > { %p1108_p0 = scmp.lt.s32.totalorder %s1347_s18, 2  ;;  %s183_s12 = sand.u32 1, %s1343_s17  }
  0x29   : > { %s1452_s13 = scalar_select %p24_p8, %s1343_s17, %s26_s10  }
  0x2a   : > { %p35_p2 = por %p34_p13, %p33_p1  ;;  %s1001_s14 = sshll.u32 %s183_s12, 4 }
  0x2b   : > { %s1082_s15 = sshll.u32 %s1347_s18, 8  ;;  %s187_s25 = scalar_lea.vmem [#allocation2], %s1001_s14 }
  0x2c   : > { %s1458_s24 = scalar_lea.hbm %s1846_s0, %s1082_s15  ;;  %s195_s26 = sshll.u32 %s187_s25, 4  ;;  %s196_s26 = int_to_ptr.vmem [resolvable:$true] %s195_s26 }
  0x2d   : > { %p1460_p7 = pnand %p1108_p0, %p35_p2  ;;  %s184_s28 = scalar_lea.sflag [#allocation3], %s183_s12 }
  0x2e   : > { %s1281_s29 = scalar_lea.hbm %s1458_s24, 256  ;;  %s1286_s5 = scalar_lea.hbm %s1846_s0, 512 }
  0x2f   : > { %p1282_p3 = scmp.ne.s32.totalorder %s1458_s24, %s1281_s29  ;;  %p1283_p6 = pneg %p1460_p7 }
  0x30   : > { %p1287_p12 = scmp.lt.s32.totalorder %s1458_s24, %s1846_s0  ;;  %p1288_p11 = scmp.lt.s32.totalorder %s1286_s5, %s1281_s29 }
  0x31   : > { %p1284_p9 = pnand %p1283_p6, %p1282_p3 }
  0x32   : > { %p1289_p1 = por %p1288_p11, %p1287_p12 }
  0x33   : > { %p1285_p10 = pneg %p1284_p9 }
  0x35   : > { %p1290_p8 = pnand %p1289_p1, %p1285_p10 }
  0x37   : > { %1293 = shalt.err (!%p1290_p8)
}
  0x38   : > { %s1294_s8 = scalar_lea.vmem %s196_s26, 256  ;;  %s1353_s10 = smov [#allocation2]  }
  0x39   : > { %p1295_p13 = scmp.ne.s32.totalorder %s196_s26, %s1294_s8  ;;  %s1299_s11 = sshll.u32 %s1353_s10, 4  ;;  %s1300_s11 = int_to_ptr.vmem [resolvable:$false] %s1299_s11 }
  0x3a   : > { %s1301_s12 = scalar_lea.vmem %s1300_s11, 512  ;;  %p1302_p3 = scmp.lt.s32.totalorder %s196_s26, %s1300_s11 }
  0x3b   : > { %p1297_p0 = pnand %p1295_p13, %p1283_p6  ;;  %p1303_p9 = scmp.lt.s32.totalorder %s1301_s12, %s1294_s8 }
  0x3d   : > { %p1298_p2 = pneg %p1297_p0  ;;  %p1304_p4 = por %p1303_p9, %p1302_p3 }
  0x3f   : > { %p1305_p5 = pnand %p1304_p4, %p1298_p2 }
  0x41   : > { %1308 = shalt.err (!%p1305_p5)
}
  0x42   : > { %1105 = dma.hbm_to_vmem [thread:$0]  (!%p1460_p7), %s1458_s24, 256, %s196_s26, %s184_s28  }
  0x43   : > { %p1858_p10 = scmp.ne.s32.totalorder %s1855_s21, 0 }
  0x44   : > { %s206_s14 = sand.u32 (!%p1858_p10), 1, %s1339_s16   ;;  %p1859_p6 = scmp.ne.s32.totalorder (!%p1858_p10), %s1854_s20, 0 }
  0x45   : > { %204 = sbr.rel (%p1858_p10) target bundleno = 447 (0x1bf), region = 32  ;;  %s1481_s15 = sshll.u32 (!%p1858_p10), %s206_s14, 4 }
  0x46   : > { %s207_s22 = scalar_lea.sflag (!%p1858_p10), [#allocation3], %s206_s14  ;;  %s210_s23 = scalar_lea.vmem (!%p1858_p10), [#allocation2], %s1481_s15 }
  0x4a   : > { %1326 = dma.done.wait (%p1859_p6), %s207_s22, 256  }
  0x4b   : > { %1328 = vsyncadd (%p1859_p6), %s207_s22, 4294967040  ;;  %p1860_p4 = scmp.eq.s32.totalorder %s1398_s19, 0 }
  0x4d   : > { %1330 = dma.done.wait (%p1860_p4), [#allocation5], 6912   ;;  %p1861_p5 = pmov %p1860_p4 }
  0x4e   : > { %v1492_v0 = vld [vmem:[#allocation4 + $0x74] ss:$8 sps:$4 sm:$0xff]   ;;  %v1494_v1 = vld [vmem:[#allocation4 + $0x70] ss:$8 sps:$4 sm:$0xff]   ;;  %v1498_v2 = vld [vmem:[#allocation4 + $0x64] ss:$8 sps:$4 sm:$0xff]  }
  0x4f   : > { %1332 = vsyncadd (%p1861_p5), [#allocation5], 4294960384  ;;  %448 = vmatprep.subr.bf16.mxu0 %v1492_v0  ;;  %492 = vmatprep.subr.bf16.mxu1 %v1492_v0  ;;  %v1502_v3 = vld [vmem:[#allocation4 + $0x60] ss:$8 sps:$4 sm:$0xff]   ;;  %v1506_v4 = vld [vmem:[#allocation4 + $0x54] ss:$8 sps:$4 sm:$0xff]  }
  0x50   : > { %449 = vmatpush1.bf16.msra.mxu0 %v1494_v1  ;;  %493 = vmatpush1.bf16.msra.mxu1 %v1494_v1  ;;  %v1510_v5 = vld [vmem:[#allocation4 + $0x50] ss:$8 sps:$4 sm:$0xff]   ;;  %v1514_v6 = vld [vmem:[#allocation4 + $0x44] ss:$8 sps:$4 sm:$0xff]   ;;  %v1518_v7 = vld [vmem:[#allocation4 + $0x40] ss:$8 sps:$4 sm:$0xff]  }
  0x51   : > { %450 = vmatprep.subr.bf16.mxu0 %v1498_v2  ;;  %494 = vmatprep.subr.bf16.mxu1 %v1498_v2  ;;  %v1522_v8 = vld [vmem:[#allocation4 + $0x34] ss:$8 sps:$4 sm:$0xff]   ;;  %v1526_v9 = vld [vmem:[#allocation4 + $0x30] ss:$8 sps:$4 sm:$0xff]   ;;  %v1530_v10 = vld [vmem:[#allocation4 + $0x24] ss:$8 sps:$4 sm:$0xff]  }
  0x52   : > { %v260_v11 = vld [vmem:[%s210_s23 + $0x8] sm:$0xff]  ;;  %vm437_vm0 = vcmask 687104   ;;  %v301_v20 = vld [vmem:[#allocation4 + $0xd0] sm:$0x33]  ;;  %vm441_vm1 = vcmask 1041408   ;;  %p248_p7 = scmp.lt.s32.totalorder %s1398_s19, 1 }
  0x53   : > { %v1534_v12 = vpack.c.bf16 %v260_v11, %v260_v11  ;;  %v1538_v13 = vld [vmem:[#allocation4 + $0x20] ss:$8 sps:$4 sm:$0xff]   ;;  %v1542_v14 = vld [vmem:[#allocation4 + $0x14] ss:$8 sps:$4 sm:$0xff]   ;;  %v1549_v17 = vld [vmem:[#allocation4 + $0x10] ss:$8 sps:$4 sm:$0xff]   ;;  %v1565_v22 = vcombine.high %v301_v20, %v301_v20  ;;  %v1038_v23 = vcombine.low %v301_v20, %v301_v20 }
  0x54   : > { %451 = vmatpush1.bf16.msra.mxu0 %v1502_v3  ;;  %495 = vmatpush1.bf16.msra.mxu1 %v1502_v3  ;;  %v1553_v18 = vld [vmem:[#allocation4 + $0x4] ss:$8 sps:$4 sm:$0xff]   ;;  %v1561_v21 = vld [vmem:[#allocation4] ss:$8 sps:$4 sm:$0xff]   ;;  %v1584_v27 = vld [vmem:[#allocation4 + $0xb4] ss:$8 sps:$4 sm:$0xff]  }
  0x55   : > { %452 = vmatprep.subr.bf16.mxu0 %v1506_v4  ;;  %496 = vmatprep.subr.bf16.mxu1 %v1506_v4  ;;  %v264_v15 = vunpack.c.l.bf16 %v1534_v12  ;;  %v1574_v24 = vsel %vm441_vm1, %v1038_v23, 0  ;;  %v1576_v25 = vld [vmem:[#allocation4 + $0xc4] ss:$8 sps:$4 sm:$0xff]   ;;  %v1580_v26 = vld [vmem:[#allocation4 + $0xc0] ss:$8 sps:$4 sm:$0xff]   ;;  %s1867_s19 = smov (!%p248_p7, %s1398_s19), 1 }
  0x56   : > { %1043 = vmatprep.mubr.msk.bf16.mxu1 %vm437_vm0, %v1534_v12  ;;  %v1588_v28 = vld [vmem:[#allocation4 + $0xb0] ss:$8 sps:$4 sm:$0xff]   ;;  %v1594_v30 = vld [vmem:[#allocation4 + $0xa4] ss:$8 sps:$4 sm:$0xff]   ;;  %v1600_v32 = vld [vmem:[#allocation4 + $0xa0] ss:$8 sps:$4 sm:$0xff]  }
  0x57   : > { %v266_v16 = vsub.f32 %v260_v11, %v264_v15  ;;  %v259_v29 = vld [vmem:[%s210_s23] sm:$0xff]  ;;  %v608_v58 = vld [vmem:[#allocation6 + $0xd0] sm:$0x33]  ;;  %s1083_s20 = sshll.u32 %s1867_s19, 4  ;;  %vm580_vm2 = vcmask 834560  }
  0x58   : > { %453 = vmatpush1.bf16.msra.mxu0 %v1510_v5  ;;  %497 = vmatpush1.bf16.msra.mxu1 %v1510_v5  ;;  %v1596_v31 = vpack.c.bf16 %v259_v29, %v259_v29  ;;  %v1604_v33 = vld [vmem:[#allocation4 + $0x94] ss:$8 sps:$4 sm:$0xff]   ;;  %v1609_v35 = vld [vmem:[#allocation4 + $0x90] ss:$8 sps:$4 sm:$0xff]   ;;  %v1613_v36 = vld [vmem:[#allocation4 + $0x84] ss:$8 sps:$4 sm:$0xff]   ;;  %v1700_v60 = vcombine.high %v608_v58, %v608_v58  ;;  %v1072_v61 = vcombine.low %v608_v58, %v608_v58  ;;  %s252_s25 = scalar_lea.vmem %s1849_s3, %s1083_s20  ;;  %s257_s27 = scalar_lea.vmem %s1850_s4, %s1083_s20 }
  0x59   : > { %454 = vmatprep.subr.bf16.mxu0 %v1514_v6  ;;  %498 = vmatprep.subr.bf16.mxu1 %v1514_v6  ;;  %v1555_v19 = vpack.c.bf16 %v266_v16, %v266_v16  ;;  %v1620_v39 = vld [vmem:[#allocation4 + $0x80] ss:$8 sps:$4 sm:$0xff]   ;;  %v1624_v40 = vld [vmem:[#allocation6 + $0x74] ss:$8 sps:$4 sm:$0xff]   ;;  %v1636_v44 = vld [vmem:[#allocation6 + $0x64] ss:$8 sps:$4 sm:$0xff]  }
  0x5a   : > { %v263_v34 = vunpack.c.l.bf16 %v1596_v31  ;;  %v1632_v43 = vld [vmem:[#allocation6 + $0x70] ss:$8 sps:$4 sm:$0xff]   ;;  %v1644_v46 = vld [vmem:[#allocation6 + $0x60] ss:$8 sps:$4 sm:$0xff]   ;;  %v1648_v47 = vld [vmem:[#allocation6 + $0x54] ss:$8 sps:$4 sm:$0xff]  }
  0x5b   : > { %1041 = vmatprep.mubr.msk.bf16.mxu0 %vm437_vm0, %v1555_v19  ;;  %v270_v37 = vunpack.c.l.bf16 %v1555_v19  ;;  %v1656_v48 = vld [vmem:[#allocation6 + $0x50] ss:$8 sps:$4 sm:$0xff]   ;;  %v1660_v49 = vld [vmem:[#allocation6 + $0x44] ss:$8 sps:$4 sm:$0xff]   ;;  %v1664_v50 = vld [vmem:[#allocation6 + $0x40] ss:$8 sps:$4 sm:$0xff]  }
  0x5c   : > { %455 = vmatpush1.bf16.msra.mxu0 %v1518_v7  ;;  %499 = vmatpush1.bf16.msra.mxu1 %v1518_v7  ;;  %v1616_v38 = vsub.f32 %v259_v29, %v263_v34  ;;  %v1668_v51 = vld [vmem:[#allocation6 + $0x34] ss:$8 sps:$4 sm:$0xff]   ;;  %v1672_v52 = vld [vmem:[#allocation6 + $0x30] ss:$8 sps:$4 sm:$0xff]   ;;  %v1676_v53 = vld [vmem:[#allocation6 + $0x24] ss:$8 sps:$4 sm:$0xff]  }
  0x5d   : > { %456 = vmatprep.subr.bf16.mxu0 %v1522_v8  ;;  %500 = vmatprep.subr.bf16.mxu1 %v1522_v8  ;;  %v272_v41 = vsub.f32 %v266_v16, %v270_v37  ;;  %v1680_v54 = vld [vmem:[#allocation6 + $0x20] ss:$8 sps:$4 sm:$0xff]   ;;  %v1684_v55 = vld [vmem:[#allocation6 + $0x14] ss:$8 sps:$4 sm:$0xff]   ;;  %v1688_v56 = vld [vmem:[#allocation6 + $0x10] ss:$8 sps:$4 sm:$0xff]  }
  0x5e   : > { %v1628_v42 = vpack.c.bf16 %v1616_v38, %v1616_v38  ;;  %v1692_v57 = vld [vmem:[#allocation6 + $0x4] ss:$8 sps:$4 sm:$0xff]   ;;  %v1696_v59 = vld [vmem:[#allocation6] ss:$8 sps:$4 sm:$0xff]   ;;  %v1709_v62 = vsel %vm441_vm1, %v1072_v61, 0 }
  0x5f   : > { %v1638_v45 = vpack.c.bf16 %v272_v41, %v272_v41  ;;  %v1711_v63 = vld [vmem:[#allocation6 + $0xc4] ss:$8 sps:$4 sm:$0xff]  }
  0x60   : > { %457 = vmatpush1.bf16.msra.mxu0 %v1526_v9  ;;  %501 = vmatpush1.bf16.msra.mxu1 %v1526_v9 }
  0x61   : > { %458 = vmatprep.subr.bf16.mxu0 %v1530_v10  ;;  %502 = vmatprep.subr.bf16.mxu1 %v1530_v10 }
  0x64   : > { %459 = vmatpush1.bf16.msra.mxu0 %v1538_v13  ;;  %503 = vmatpush1.bf16.msra.mxu1 %v1538_v13 }
  0x65   : > { %460 = vmatprep.subr.bf16.mxu0 %v1542_v14  ;;  %504 = vmatprep.subr.bf16.mxu1 %v1542_v14 }
  0x68   : > { %461 = vmatpush1.bf16.msra.mxu0 %v1549_v17  ;;  %505 = vmatpush1.bf16.msra.mxu1 %v1549_v17 }
  0x69   : > { %462 = vmatprep.subr.bf16.mxu0 %v1553_v18  ;;  %506 = vmatprep.subr.bf16.mxu1 %v1553_v18 }
  0x6c   : > { %463 = vmatpush1.bf16.msra.mxu0 %v1561_v21  ;;  %507 = vmatpush1.bf16.msra.mxu1 %v1561_v21 }
  0x6d   : > { %1040 = vmatprep.subr.msk.bf16.mxu0 %vm441_vm1, %v1565_v22  ;;  %1042 = vmatprep.subr.msk.bf16.mxu1 %vm441_vm1, %v1565_v22 }
  0x70   : > { %469 = vmatpush2.bf16.msra.mxu0 %v1574_v24  ;;  %513 = vmatpush2.bf16.msra.mxu1 %v1574_v24 }
  0x71   : > { %470 = vmatprep.subr.bf16.mxu0 %v1576_v25  ;;  %514 = vmatprep.subr.bf16.mxu1 %v1576_v25 }
  0x74   : > { %471 = vmatpush2.bf16.msra.mxu0 %v1580_v26  ;;  %515 = vmatpush2.bf16.msra.mxu1 %v1580_v26 }
  0x75   : > { %472 = vmatprep.subr.bf16.mxu0 %v1584_v27  ;;  %516 = vmatprep.subr.bf16.mxu1 %v1584_v27 }
  0x78   : > { %473 = vmatpush2.bf16.msra.mxu0 %v1588_v28  ;;  %517 = vmatpush2.bf16.msra.mxu1 %v1588_v28 }
  0x79   : > { %474 = vmatprep.subr.bf16.mxu0 %v1594_v30  ;;  %518 = vmatprep.subr.bf16.mxu1 %v1594_v30 }
  0x7c   : > { %475 = vmatpush2.bf16.msra.mxu0 %v1600_v32  ;;  %519 = vmatpush2.bf16.msra.mxu1 %v1600_v32 }
  0x7d   : > { %476 = vmatprep.subr.bf16.mxu0 %v1604_v33  ;;  %520 = vmatprep.subr.bf16.mxu1 %v1604_v33 }
  0x80   : > { %477 = vmatpush2.bf16.msra.mxu0 %v1609_v35  ;;  %521 = vmatpush2.bf16.msra.mxu1 %v1609_v35 }
  0x81   : > { %478 = vmatprep.subr.bf16.mxu0 %v1613_v36  ;;  %522 = vmatprep.subr.bf16.mxu1 %v1613_v36 }
  0x84   : > { %479 = vmatpush2.bf16.msra.mxu0 %v1620_v39  ;;  %523 = vmatpush2.bf16.msra.mxu1 %v1620_v39 }
  0x85   : > { %536 = vmatprep.subr.bf16.mxu0 %v1492_v0  ;;  %750 = vmatprep.subr.bf16.mxu1 %v1624_v40  ;;  %v1715_v0 = vld [vmem:[#allocation6 + $0xc0] ss:$8 sps:$4 sm:$0xff]  }
  0x87   : > { %481 = vmatmul.mubr.bf16.vlgmr.msra.gmra.mxu0 %v1628_v42  ;;  %525 = vmatmul.mubr.bf16.vlgmr.msra.gmra.mxu1 %v1596_v31 }
  0x88   : > { %537 = vmatpush1.bf16.msra.mxu0 %v1494_v1  ;;  %751 = vmatpush1.bf16.msra.mxu1 %v1632_v43  ;;  %v1719_v1 = vld [vmem:[#allocation6 + $0xb4] ss:$8 sps:$4 sm:$0xff]  }
  0x89   : > { %538 = vmatprep.subr.bf16.mxu0 %v1498_v2  ;;  %752 = vmatprep.subr.bf16.mxu1 %v1636_v44  ;;  %v1723_v2 = vld [vmem:[#allocation6 + $0xb0] ss:$8 sps:$4 sm:$0xff]  }
  0x8a   : > { %1045 = vmatprep.mubr.msk.bf16.mxu0 %vm437_vm0, %v1638_v45  ;;  %1075 = vmatprep.mubr.msk.bf16.mxu1 %vm437_vm0, %v1555_v19 }
  0x8c   : > { %539 = vmatpush1.bf16.msra.mxu0 %v1502_v3  ;;  %753 = vmatpush1.bf16.msra.mxu1 %v1644_v46  ;;  %v1727_v3 = vld [vmem:[#allocation6 + $0xa4] ss:$8 sps:$4 sm:$0xff]  }
  0x8d   : > { %540 = vmatprep.subr.bf16.mxu0 %v1506_v4  ;;  %754 = vmatprep.subr.bf16.mxu1 %v1648_v47  ;;  %v1731_v4 = vld [vmem:[#allocation6 + $0xa0] ss:$8 sps:$4 sm:$0xff]  }
  0x90   : > { %541 = vmatpush1.bf16.msra.mxu0 %v1510_v5  ;;  %755 = vmatpush1.bf16.msra.mxu1 %v1656_v48  ;;  %v1735_v5 = vld [vmem:[#allocation6 + $0x94] ss:$8 sps:$4 sm:$0xff]  }
  0x91   : > { %542 = vmatprep.subr.bf16.mxu0 %v1514_v6  ;;  %756 = vmatprep.subr.bf16.mxu1 %v1660_v49  ;;  %v269_v6 = vunpack.c.l.bf16 %v1628_v42 }
  0x94   : > { %543 = vmatpush1.bf16.msra.mxu0 %v1518_v7  ;;  %757 = vmatpush1.bf16.msra.mxu1 %v1664_v50  ;;  %v1740_v7 = vld [vmem:[#allocation6 + $0x90] ss:$8 sps:$4 sm:$0xff]  }
  0x95   : > { %544 = vmatprep.subr.bf16.mxu0 %v1522_v8  ;;  %758 = vmatprep.subr.bf16.mxu1 %v1668_v51  ;;  %v1744_v8 = vld [vmem:[#allocation6 + $0x84] ss:$8 sps:$4 sm:$0xff]  }
  0x98   : > { %545 = vmatpush1.bf16.msra.mxu0 %v1526_v9  ;;  %759 = vmatpush1.bf16.msra.mxu1 %v1672_v52  ;;  %v271_v9 = vsub.f32 %v1616_v38, %v269_v6 }
  0x99   : > { %546 = vmatprep.subr.bf16.mxu0 %v1530_v10  ;;  %760 = vmatprep.subr.bf16.mxu1 %v1676_v53  ;;  %v1749_v10 = vld [vmem:[#allocation6 + $0x80] ss:$8 sps:$4 sm:$0xff]  }
  0x9a   : > { %v1753_v11 = vpack.c.bf16 %v271_v9, %v271_v9 }
  0x9c   : > { %547 = vmatpush1.bf16.msra.mxu0 %v1538_v13  ;;  %761 = vmatpush1.bf16.msra.mxu1 %v1680_v54 }
  0x9d   : > { %548 = vmatprep.subr.bf16.mxu0 %v1542_v14  ;;  %762 = vmatprep.subr.bf16.mxu1 %v1684_v55 }
  0xa0   : > { %549 = vmatpush1.bf16.msra.mxu0 %v1549_v17  ;;  %763 = vmatpush1.bf16.msra.mxu1 %v1688_v56 }
  0xa1   : > { %550 = vmatprep.subr.bf16.mxu0 %v1553_v18  ;;  %764 = vmatprep.subr.bf16.mxu1 %v1692_v57 }
  0xa4   : > { %551 = vmatpush1.bf16.msra.mxu0 %v1561_v21  ;;  %765 = vmatpush1.bf16.msra.mxu1 %v1696_v59 }
  0xa5   : > { %1044 = vmatprep.subr.msk.bf16.mxu0 %vm441_vm1, %v1565_v22  ;;  %1074 = vmatprep.subr.msk.bf16.mxu1 %vm441_vm1, %v1700_v60 }
  0xa8   : > { %557 = vmatpush2.bf16.msra.mxu0 %v1574_v24  ;;  %771 = vmatpush2.bf16.msra.mxu1 %v1709_v62 }
  0xa9   : > { %558 = vmatprep.subr.bf16.mxu0 %v1576_v25  ;;  %772 = vmatprep.subr.bf16.mxu1 %v1711_v63 }
  0xac   : > { %559 = vmatpush2.bf16.msra.mxu0 %v1580_v26  ;;  %773 = vmatpush2.bf16.msra.mxu1 %v1715_v0 }
  0xad   : > { %560 = vmatprep.subr.bf16.mxu0 %v1584_v27  ;;  %774 = vmatprep.subr.bf16.mxu1 %v1719_v1 }
  0xb0   : > { %561 = vmatpush2.bf16.msra.mxu0 %v1588_v28  ;;  %775 = vmatpush2.bf16.msra.mxu1 %v1723_v2 }
  0xb1   : > { %562 = vmatprep.subr.bf16.mxu0 %v1594_v30  ;;  %776 = vmatprep.subr.bf16.mxu1 %v1727_v3 }
  0xb4   : > { %563 = vmatpush2.bf16.msra.mxu0 %v1600_v32  ;;  %777 = vmatpush2.bf16.msra.mxu1 %v1731_v4 }
  0xb5   : > { %564 = vmatprep.subr.bf16.mxu0 %v1604_v33  ;;  %778 = vmatprep.subr.bf16.mxu1 %v1735_v5 }
  0xb8   : > { %565 = vmatpush2.bf16.msra.mxu0 %v1609_v35  ;;  %779 = vmatpush2.bf16.msra.mxu1 %v1740_v7 }
  0xb9   : > { %566 = vmatprep.subr.bf16.mxu0 %v1613_v36  ;;  %780 = vmatprep.subr.bf16.mxu1 %v1744_v8 }
  0xbc   : > { %567 = vmatpush2.bf16.msra.mxu0 %v1620_v39  ;;  %781 = vmatpush2.bf16.msra.mxu1 %v1749_v10 }
  0xbd   : > { %791 = vmatprep.subr.bf16.mxu0 %v1624_v40  ;;  %832 = vmatprep.subr.bf16.mxu1 %v1624_v40 }
  0xbf   : > { %569 = vmatmul.mubr.bf16.vlgmr.msra.gmra.mxu0 %v1753_v11  ;;  %783 = vmatmul.mubr.bf16.vlgmr.msra.gmra.mxu1 %v1628_v42 }
  0xc0   : > { %792 = vmatpush1.bf16.msra.mxu0 %v1632_v43  ;;  %833 = vmatpush1.bf16.msra.mxu1 %v1632_v43 }
  0xc1   : > { %793 = vmatprep.subr.bf16.mxu0 %v1636_v44  ;;  %834 = vmatprep.subr.bf16.mxu1 %v1636_v44 }
  0xc2   : > { %1077 = vmatprep.mubr.msk.bf16.mxu0 %vm437_vm0, %v1534_v12  ;;  %1079 = vmatprep.mubr.msk.bf16.mxu1 %vm437_vm0, %v1638_v45 }
  0xc4   : > { %794 = vmatpush1.bf16.msra.mxu0 %v1644_v46  ;;  %835 = vmatpush1.bf16.msra.mxu1 %v1644_v46 }
  0xc5   : > { %795 = vmatprep.subr.bf16.mxu0 %v1648_v47  ;;  %836 = vmatprep.subr.bf16.mxu1 %v1648_v47 }
  0xc8   : > { %796 = vmatpush1.bf16.msra.mxu0 %v1656_v48  ;;  %837 = vmatpush1.bf16.msra.mxu1 %v1656_v48 }
  0xc9   : > { %797 = vmatprep.subr.bf16.mxu0 %v1660_v49  ;;  %838 = vmatprep.subr.bf16.mxu1 %v1660_v49 }
  0xcc   : > { %798 = vmatpush1.bf16.msra.mxu0 %v1664_v50  ;;  %839 = vmatpush1.bf16.msra.mxu1 %v1664_v50 }
  0xcd   : > { %799 = vmatprep.subr.bf16.mxu0 %v1668_v51  ;;  %840 = vmatprep.subr.bf16.mxu1 %v1668_v51 }
  0xd0   : > { %800 = vmatpush1.bf16.msra.mxu0 %v1672_v52  ;;  %841 = vmatpush1.bf16.msra.mxu1 %v1672_v52 }
  0xd1   : > { %801 = vmatprep.subr.bf16.mxu0 %v1676_v53  ;;  %842 = vmatprep.subr.bf16.mxu1 %v1676_v53 }
  0xd4   : > { %802 = vmatpush1.bf16.msra.mxu0 %v1680_v54  ;;  %843 = vmatpush1.bf16.msra.mxu1 %v1680_v54 }
  0xd5   : > { %803 = vmatprep.subr.bf16.mxu0 %v1684_v55  ;;  %844 = vmatprep.subr.bf16.mxu1 %v1684_v55 }
  0xd8   : > { %804 = vmatpush1.bf16.msra.mxu0 %v1688_v56  ;;  %845 = vmatpush1.bf16.msra.mxu1 %v1688_v56 }
  0xd9   : > { %805 = vmatprep.subr.bf16.mxu0 %v1692_v57  ;;  %846 = vmatprep.subr.bf16.mxu1 %v1692_v57 }
  0xdc   : > { %806 = vmatpush1.bf16.msra.mxu0 %v1696_v59  ;;  %847 = vmatpush1.bf16.msra.mxu1 %v1696_v59 }
  0xdd   : > { %1076 = vmatprep.subr.msk.bf16.mxu0 %vm441_vm1, %v1700_v60  ;;  %1078 = vmatprep.subr.msk.bf16.mxu1 %vm441_vm1, %v1700_v60 }
  0xe0   : > { %812 = vmatpush2.bf16.msra.mxu0 %v1709_v62  ;;  %853 = vmatpush2.bf16.msra.mxu1 %v1709_v62 }
  0xe1   : > { %813 = vmatprep.subr.bf16.mxu0 %v1711_v63  ;;  %854 = vmatprep.subr.bf16.mxu1 %v1711_v63 }
  0xe4   : > { %814 = vmatpush2.bf16.msra.mxu0 %v1715_v0  ;;  %855 = vmatpush2.bf16.msra.mxu1 %v1715_v0 }
  0xe5   : > { %815 = vmatprep.subr.bf16.mxu0 %v1719_v1  ;;  %856 = vmatprep.subr.bf16.mxu1 %v1719_v1 }
  0xe8   : > { %816 = vmatpush2.bf16.msra.mxu0 %v1723_v2  ;;  %857 = vmatpush2.bf16.msra.mxu1 %v1723_v2 }
  0xe9   : > { %817 = vmatprep.subr.bf16.mxu0 %v1727_v3  ;;  %858 = vmatprep.subr.bf16.mxu1 %v1727_v3 }
  0xec   : > { %818 = vmatpush2.bf16.msra.mxu0 %v1731_v4  ;;  %859 = vmatpush2.bf16.msra.mxu1 %v1731_v4 }
  0xed   : > { %819 = vmatprep.subr.bf16.mxu0 %v1735_v5  ;;  %860 = vmatprep.subr.bf16.mxu1 %v1735_v5 }
  0xf0   : > { %820 = vmatpush2.bf16.msra.mxu0 %v1740_v7  ;;  %861 = vmatpush2.bf16.msra.mxu1 %v1740_v7 }
  0xf1   : > { %821 = vmatprep.subr.bf16.mxu0 %v1744_v8  ;;  %862 = vmatprep.subr.bf16.mxu1 %v1744_v8 }
  0xf4   : > { %822 = vmatpush2.bf16.msra.mxu0 %v1749_v10  ;;  %863 = vmatpush2.bf16.msra.mxu1 %v1749_v10 }
  0xf7   : > { %824 = vmatmul.mubr.bf16.vlgmr.msra.gmra.mxu0 %v1596_v31  ;;  %865 = vmatmul.mubr.bf16.vlgmr.msra.gmra.mxu1 %v1753_v11 }
 0x147   : > { %v482_v12 = vpop.f32.mrf.mxu0  ;;  %v526_v13 = vpop.f32.mrf.mxu1 }
 0x148   : > { %v527_v20 = vadd.f32 %v526_v13, %v482_v12 }
 0x149   : > { %v484_v14 = vpop.f32.mrf.mxu0  ;;  %v528_v15 = vpop.f32.mrf.mxu1 }
 0x14a   : > { %v529_v23 = vadd.f32 %v528_v15, %v484_v14 }
 0x14b   : > { %v486_v16 = vpop.f32.mrf.mxu0  ;;  %v530_v17 = vpop.f32.mrf.mxu1 }
 0x14d   : > { %v487_v18 = vpop.f32.mrf.mxu0  ;;  %v531_v19 = vpop.f32.mrf.mxu1 }
 0x17f   : > { %v570_v21 = vpop.f32.mrf.mxu0  ;;  %v784_v22 = vpop.f32.mrf.mxu1 }
 0x180   : > { %v577_v24 = vadd.f32 %v570_v21, %v527_v20 }
 0x181   : > { %v572_v25 = vpop.f32.mrf.mxu0  ;;  %v786_v26 = vpop.f32.mrf.mxu1 }
 0x182   : > { %579 = vst [vmem:[%s252_s25] sm:$0xff] %v577_v24  ;;  %v578_v27 = vadd.f32 %v572_v25, %v529_v23 }
 0x183   : > { %v574_v28 = vpop.f32.mrf.mxu0  ;;  %v788_v29 = vpop.f32.mrf.mxu1 }
 0x184   : > { %581 = vst.msk [vmem:[%s252_s25 + $0x8] sm:$0xff] %vm580_vm2, %v578_v27 }
 0x185   : > { %v575_v30 = vpop.f32.mrf.mxu0  ;;  %v789_v31 = vpop.f32.mrf.mxu1 }
 0x1b7   : > { %v825_v32 = vpop.f32.mrf.mxu0  ;;  %v866_v33 = vpop.f32.mrf.mxu1 }
 0x1b8   : > { %v826_v34 = vadd.f32 %v825_v32, %v784_v22 }
 0x1b9   : > { %v827_v35 = vpop.f32.mrf.mxu0  ;;  %v868_v36 = vpop.f32.mrf.mxu1 }
 0x1ba   : > { %v873_v37 = vadd.f32 %v866_v33, %v826_v34  ;;  %v828_v38 = vadd.f32 %v827_v35, %v786_v26 }
 0x1bb   : > { %v829_v39 = vpop.f32.mrf.mxu0  ;;  %v870_v40 = vpop.f32.mrf.mxu1 }
 0x1bc   : > { %875 = vst [vmem:[%s257_s27] sm:$0xff] %v873_v37  ;;  %v874_v41 = vadd.f32 %v868_v36, %v828_v38 }
 0x1bd   : > { %v830_v42 = vpop.f32.mrf.mxu0  ;;  %v871_v43 = vpop.f32.mrf.mxu1 }
 0x1be   : > { %876 = vst.msk [vmem:[%s257_s27 + $0x8] sm:$0xff] %vm580_vm2, %v874_v41 }
 0x1bf PF: > { %p16_p12 = scmp.ge.s32.totalorder %s1441_s9, 4   ;;  %s1862_s15 = smov %s1339_s16 }
 0x1c0   : > { %s1863_s16 = smov %s1343_s17  ;;  %s1864_s17 = smov %s1452_s13 }
 0x1c1   : > { %s1865_s18 = smov %s1441_s9  ;;  %18 = sbr.rel (!%p16_p12) target bundleno = 4 (0x4), region = 92 }
 0x1c6   :  { %914 = vsyncpa [#allocation3], 1 }
 0x1c7   :  { %916 = vsyncpa [#allocation3 + $0x1], 1 }
 0x1c8   :  { %917 = vsyncpa [#allocation5], 1 }

</bundles_post_ra>
